<compile_context>
chip_gen: v6e
topology: v6e:2x2x1
jax: 0.10.0
libtpu: 0.0.40
codegen_flags: <defaults>
</compile_context>

<pallas_src>
import functools
import math

import jax
import jax.numpy as jnp
from jax.experimental import pallas as pl
from jax.experimental.pallas import tpu as pltpu

_SQRT_2_OVER_PI = math.sqrt(2.0 / math.pi)
_INV_SQRT_2 = 1.0 / math.sqrt(2.0)

# Rows per sublane group (dtype packing granule), keyed by itemsize.
_SUBLANE_GRANULE = {4: 8, 2: 16, 1: 32}

_TARGET_BLOCK_BYTES = 4 * 1024 * 1024    # ~4 MiB blocks: >=85% of HBM roofline
_VMEM_LIMIT_BYTES = 32 * 1024 * 1024     # 2 operands x 2 buffers x 4 MiB << 32 MiB
_MIN_PALLAS_ELEMS = 1 << 16              # below this, fused XLA elementwise wins
_MAX_LANES = 2048
_FALLBACK_LANES = 1024


def _gelu_math(xf, approximate):
    """GELU in f32, matching the PyTorch module's two branches exactly."""
    if approximate:
        inner = _SQRT_2_OVER_PI * (xf + 0.044715 * (xf * xf * xf))
        cdf = 0.5 * (1.0 + jnp.tanh(inner))
    else:
        cdf = 0.5 * (1.0 + jax.lax.erf(xf * _INV_SQRT_2))
    return xf * cdf


def _gelu_kernel(x_ref, o_ref, *, approximate):
    xf = x_ref[...].astype(jnp.float32)   # compute in f32, one EUP tanh per elem
    o_ref[...] = _gelu_math(xf, approximate).astype(o_ref.dtype)


def _gelu_jnp(x, approximate):
    return _gelu_math(x.astype(jnp.float32), approximate).astype(x.dtype)


def _round_up(v, m):
    return ((v + m - 1) // m) * m


def _pick_lanes(n):
    """Widest multiple of 128 in [128, 2048] that divides n, else None."""
    for c in range(_MAX_LANES, 127, -128):
        if n % c == 0:
            return c
    return None


def _pick_tile_rows(rows, cols, itemsize):
    """Row tile from a block-byte budget, sublane-aligned, even #steps."""
    granule = _SUBLANE_GRANULE.get(itemsize, 8)
    budget = max(granule,
                 (_TARGET_BLOCK_BYTES // (cols * itemsize)) // granule * granule)
    if rows <= budget:
        if rows >= 4 * granule:
            # Split into 2 near-equal steps so both v7x cores get work.
            tr = _round_up(pl.cdiv(rows, 2), granule)
        else:
            tr = rows                    # single block == full extent (allowed)
    else:
        steps = pl.cdiv(rows, budget)
        if steps % 2:
            steps += 1                   # even #steps -> balanced megacore split
        tr = _round_up(pl.cdiv(rows, steps), granule)
    return min(tr, rows)


def _gelu_2d(x2d, approximate):
    rows, cols = x2d.shape
    tr = _pick_tile_rows(rows, cols, jnp.dtype(x2d.dtype).itemsize)
    grid = (pl.cdiv(rows, tr),)
    kernel = functools.partial(_gelu_kernel, approximate=approximate)
    return pl.pallas_call(
        kernel,
        out_shape=jax.ShapeDtypeStruct((rows, cols), x2d.dtype),
        grid_spec=pltpu.PrefetchScalarGridSpec(
            num_scalar_prefetch=0,
            grid=grid,
            in_specs=[pl.BlockSpec((tr, cols), lambda i: (i, 0))],
            out_specs=pl.BlockSpec((tr, cols), lambda i: (i, 0)),
        ),
        compiler_params=pltpu.CompilerParams(
            dimension_semantics=("parallel",),
            vmem_limit_bytes=_VMEM_LIMIT_BYTES,
        ),
    )(x2d)


def gelu(x, *, approximate=True, min_pallas_elements=_MIN_PALLAS_ELEMS):
    """GELU matching the BigNAS GELU module (default approximate=True = tanh).

    Note: this module's default differs from torch.nn.GELU (which defaults to
    the exact-erf branch); both branches are implemented.
    """
    orig_shape = x.shape
    n = x.size
    if n == 0:
        return x
    if n < min_pallas_elements:
        # Tiny activations: pallas_call launch/pipeline overhead dominates.
        return _gelu_jnp(x, approximate)

    flat = jnp.ravel(x)                               # no-copy reshape
    cols = _pick_lanes(n)
    if cols is not None:
        out = _gelu_2d(flat.reshape(n // cols, cols), approximate)
        return out.reshape(orig_shape)

    # No lane-aligned factorisation of n: run the kernel on the cols-aligned
    # prefix and compute the (< cols element) tail with plain jnp.  This avoids
    # the old full-array pad + output slice (two extra HBM passes).
    cols = _FALLBACK_LANES
    n_main = (n // cols) * cols
    if n_main == 0:
        return _gelu_jnp(x, approximate)
    main = _gelu_2d(flat[:n_main].reshape(n_main // cols, cols), approximate)
    tail = _gelu_jnp(flat[n_main:], approximate)
    return jnp.concatenate([main.reshape(-1), tail]).reshape(orig_shape)


if __name__ == "__main__":
    key = jax.random.PRNGKey(0)
    k0, k1, k2, k3 = jax.random.split(key, 4)

    # 1) Module-sized NCHW activation, forced through the Pallas kernel.
    x = jax.random.normal(k0, (2, 4, 16, 16), dtype=jnp.float32)
    y = jax.block_until_ready(gelu(x, min_pallas_elements=0))
    assert y.shape == x.shape and y.dtype == x.dtype
    assert jnp.allclose(y, _gelu_jnp(x, True), atol=1e-5, rtol=1e-5)

    # 2) Larger f32 activation: default path, 2-step parallel grid.
    x1 = jax.random.normal(k1, (8, 32, 32, 32), dtype=jnp.float32)
    y1 = jax.block_until_ready(gelu(x1))
    assert jnp.allclose(y1, _gelu_jnp(x1, True), atol=1e-5, rtol=1e-5)

    # 3) bf16 activation (16-row sublane granule).
    xb = jax.random.normal(k2, (4, 128, 16, 16), dtype=jnp.bfloat16)
    yb = jax.block_until_ready(gelu(xb))
    assert yb.shape == xb.shape and yb.dtype == jnp.bfloat16
    assert jnp.allclose(yb.astype(jnp.float32),
                        _gelu_jnp(xb, True).astype(jnp.float32),
                        atol=1e-2, rtol=1e-2)

    # 4) Large awkward (non-128-divisible) shape: prefix kernel + jnp tail.
    xa = jax.random.normal(k3, (13, 17, 19, 21), dtype=jnp.float32)
    ya = jax.block_until_ready(gelu(xa))
    assert ya.shape == xa.shape
    assert jnp.allclose(ya, _gelu_jnp(xa, True), atol=1e-5, rtol=1e-5)

    # 5) Exact-erf branch + tiny-tensor bypass (pure-jnp small path).
    xs = jax.random.normal(k0, (3, 5, 7), dtype=jnp.float32)
    assert jnp.allclose(gelu(xs, approximate=False), _gelu_jnp(xs, False), atol=1e-6)
    assert jnp.allclose(gelu(xs), _gelu_jnp(xs, True), atol=1e-6)

    print("KERNEL_OK")
</pallas_src>

<mosaic_0001>
module attributes {stable_mosaic.version = 11 : i64} {
  func.func @_gelu_kernel(%arg0: i32, %arg1: memref<1x2048xf32, #tpu.memory_space<vmem>>, %arg2: memref<1x2048xf32, #tpu.memory_space<vmem>>) attributes {dimension_semantics = [#tpu.dimension_semantics<parallel>], iteration_bounds = array<i64: 1>, scalar_prefetch = 0 : i64, scratch_operands = 0 : i64, tpu.core_type = #tpu.core_type<tc>, window_params = [{transform_indices = @transform_0, window_bounds = array<i64: 1, 2048>}, {transform_indices = @transform_1, window_bounds = array<i64: 1, 2048>}]} {
    %c0 = arith.constant 0 : index
    %c0_0 = arith.constant 0 : index
    %0 = vector.load %arg1[%c0, %c0_0] : memref<1x2048xf32, #tpu.memory_space<vmem>>, vector<1x2048xf32>
    %1 = arith.mulf %0, %0 : vector<1x2048xf32>
    %2 = arith.mulf %1, %0 : vector<1x2048xf32>
    %cst = arith.constant 4.471500e-02 : f32
    %3 = vector.broadcast %cst : f32 to vector<1x2048xf32>
    %4 = arith.mulf %3, %2 : vector<1x2048xf32>
    %5 = arith.addf %0, %4 : vector<1x2048xf32>
    %cst_1 = arith.constant 0.797884583 : f32
    %6 = vector.broadcast %cst_1 : f32 to vector<1x2048xf32>
    %7 = arith.mulf %6, %5 : vector<1x2048xf32>
    %8 = math.tanh %7 : vector<1x2048xf32>
    %cst_2 = arith.constant 1.000000e+00 : f32
    %9 = vector.broadcast %cst_2 : f32 to vector<1x2048xf32>
    %10 = arith.addf %9, %8 : vector<1x2048xf32>
    %cst_3 = arith.constant 5.000000e-01 : f32
    %11 = vector.broadcast %cst_3 : f32 to vector<1x2048xf32>
    %12 = arith.mulf %11, %10 : vector<1x2048xf32>
    %13 = arith.mulf %0, %12 : vector<1x2048xf32>
    %c0_4 = arith.constant 0 : index
    %c0_5 = arith.constant 0 : index
    %14 = vector.load %arg2[%c0_4, %c0_5] : memref<1x2048xf32, #tpu.memory_space<vmem>>, vector<1x2048xf32>
    tpu.vector_store %arg2[%c0_4, %c0_5], %13 {strides = array<i32>} : memref<1x2048xf32, #tpu.memory_space<vmem>>, vector<1x2048xf32>,
    return
  }
  func.func @transform_0(%arg0: i32) -> (i32, i32) {
    %c0_i32 = arith.constant 0 : i32
    %c0_i32_0 = arith.constant 0 : i32
    return %arg0, %c0_i32 : i32, i32
  }
  func.func @transform_1(%arg0: i32) -> (i32, i32) {
    %c0_i32 = arith.constant 0 : i32
    %c0_i32_0 = arith.constant 0 : i32
    return %arg0, %c0_i32 : i32, i32
  }
}

</mosaic_0001>

<bundles_post_ra>
// kernel: tpu_custom_call.1
= control target key start
LH: loop header
LB: loop body
LE: loop exit
PB: predicated region body
PF: predicated region fallthrough
CT: control target
= control target key end

     0   :  { %6 = vsyncpa [#allocation3], 0  ;;  %s126_s0 = inlined_call_operand.hbm [shape: f32[1,2048], index: 0, kind: input, shape index: {}]   ;;  %s127_s1 = inlined_call_operand.hbm [shape: f32[1,2048], index: 1, kind: output, shape index: {}]  }
   0x1   :  { %7 = vsyncpa [#allocation4], 0  ;;  %s108_s6 = smov [#allocation2]  }
   0x2   :  { %s14_s7 = sshll.u32 %s108_s6, 4  ;;  %s15_s7 = int_to_ptr.vmem [resolvable:$true] %s14_s7 }
   0x3   :  { %s72_s8 = scalar_lea.vmem %s15_s7, 256  ;;  %p77_p1 = scmp.lt.s32.totalorder %s15_s7, %s15_s7 }
   0x4   :  { %p73_p0 = scmp.ne.s32.totalorder %s15_s7, %s72_s8  ;;  %p78_p2 = scmp.lt.s32.totalorder %s72_s8, %s72_s8 }
   0x6   :  { %p79_p3 = por %p78_p2, %p77_p1 }
   0x8   :  { %p80_p4 = pnand %p79_p3, %p73_p0 }
   0xa   :  { %83 = shalt.err (!%p80_p4)
}
   0xb   :  { %17 = dma.hbm_to_vmem [thread:$0]  %s126_s0, 256, %s15_s7, [#allocation3]  }
   0xc   :  { %104 = dma.done.wait [#allocation3], 256  }
   0xd   :  { %105 = vsyncadd [#allocation3], 4294967040  ;;  %v21_v0 = vld [vmem:[#allocation2] sm:$0xff]  ;;  %v22_v1 = vld [vmem:[#allocation2 + $0x8] sm:$0xff]  ;;  %s109_s0 = smov [#allocation5]  }
   0xe   :  { %v23_v2 = vmul.f32 %v21_v0, %v21_v0  ;;  %v24_v3 = vmul.f32 %v22_v1, %v22_v1  ;;  %s49_s11 = sshll.u32 %s109_s0, 4  ;;  %s50_s11 = int_to_ptr.vmem [resolvable:$true] %s49_s11 }
   0xf   :  { %s84_s12 = scalar_lea.vmem %s50_s11, 256  ;;  %p89_p6 = scmp.lt.s32.totalorder %s50_s11, %s50_s11 }
  0x10   :  { %v25_v4 = vmul.f32 %v23_v2, %v21_v0  ;;  %v26_v5 = vmul.f32 %v24_v3, %v22_v1  ;;  %p85_p5 = scmp.ne.s32.totalorder %s50_s11, %s84_s12  ;;  %p90_p7 = scmp.lt.s32.totalorder %s84_s12, %s84_s12 }
  0x12   :  { %v27_v6 = vmul.f32 0.044715, %v25_v4  ;;  %v28_v7 = vmul.f32 0.044715, %v26_v5  ;;  %p91_p8 = por %p90_p7, %p89_p6 }
  0x14   :  { %v29_v8 = vadd.f32 %v27_v6, %v21_v0  ;;  %v30_v9 = vadd.f32 %v28_v7, %v22_v1  ;;  %p92_p9 = pnand %p91_p8, %p85_p5 }
  0x16   :  { %v31_v10 = vmul.f32 0.7978846, %v29_v8  ;;  %v32_v11 = vmul.f32 0.7978846, %v30_v9 }
  0x18   :  { %60 = vtanh.f32 %v31_v10 }
  0x19   :  { %62 = vtanh.f32 %v32_v11 }
  0x25   :  { %v61_v12 = vpop.eup %60 }
  0x26   :  { %v63_v13 = vpop.eup %62  ;;  %v35_v14 = vadd.f32 1.0, %v61_v12 }
  0x27   :  { %v36_v15 = vadd.f32 1.0, %v63_v13 }
  0x28   :  { %v37_v16 = vmul.f32 0.5, %v35_v14 }
  0x29   :  { %v38_v17 = vmul.f32 0.5, %v36_v15 }
  0x2a   :  { %v39_v18 = vmul.f32 %v37_v16, %v21_v0 }
  0x2b   :  { %v40_v19 = vmul.f32 %v38_v17, %v22_v1 }
  0x2c   :  { %41 = vst [vmem:[#allocation5] sm:$0xff] %v39_v18 }
  0x2d   :  { %42 = vst [vmem:[#allocation5 + $0x8] sm:$0xff] %v40_v19 }
  0x2e   :  { %95 = shalt.err (!%p92_p9)
}
  0x2f   :  { %52 = dma.vmem_to_hbm [thread:$0]  %s50_s11, 256, %s127_s1, [#allocation4]  }
  0x30   :  { %106 = dma.done.wait [#allocation4], 256  }
  0x31   :  { %107 = vsyncadd [#allocation4], 4294967040 }
  0x32   :  { %56 = vsyncpa [#allocation3], 1 }
  0x33   :  { %57 = vsyncpa [#allocation4], 1 }

</bundles_post_ra>
